<compile_context>
chip_gen: v7x
topology: tpu7x:2x2x1
jax: 0.10.0
libtpu: 0.0.40
codegen_flags: <defaults>
</compile_context>

<pallas_src>
import jax
import jax.numpy as jnp
from jax.experimental import pallas as pl
from jax.experimental.pallas import tpu as pltpu

N_ACTION = 4
HIDDEN1 = 128
HIDDEN2 = 64
LOG_STD_MIN = -20.0
LOG_STD_MAX = 2.0
INIT_W = 0.003

TB_MAX = 8192                 # ceiling on batch-tile rows (multiple of 8)
VMEM_BUDGET = 24 * 1024 * 1024  # ~24 MiB per-core working-set budget
VMEM_LIMIT = 32 * 1024 * 1024   # explicit scoped-VMEM limit (clean compile failure)


def _cdiv(a, b):
    return (a + b - 1) // b


def _round_up(x, m):
    return _cdiv(x, m) * m


def actor_pi_kernel(state_ref, w1_ref, b1_ref, w2_ref, b2_ref, wh_ref, bh_ref,
                    out_ref):
    x = state_ref[...]

    # linear1 + relu  (num_inputs -> 128)
    h1 = jnp.dot(x, w1_ref[...], preferred_element_type=jnp.float32) + b1_ref[...]
    h1 = jnp.maximum(h1, 0.0)

    # linear2 + relu  (128 -> 64)
    h2 = jnp.dot(h1, w2_ref[...], preferred_element_type=jnp.float32) + b2_ref[...]
    h2 = jnp.maximum(h2, 0.0)

    # fused heads: one (64 -> 2*N_ACTION) matmul; cols [0:N_ACTION] = mean,
    # cols [N_ACTION:2*N_ACTION] = log_std (clamped).
    heads = jnp.dot(h2, wh_ref[...], preferred_element_type=jnp.float32) + bh_ref[...]
    col = jax.lax.broadcasted_iota(jnp.int32, heads.shape, 1)
    clamped = jnp.clip(heads, LOG_STD_MIN, LOG_STD_MAX)
    out_ref[...] = jnp.where(col >= N_ACTION, clamped, heads)


def _pick_batch_tile(B, num_inputs):
    """Pick a batch tile (multiple of 8) sized for VMEM and >=2 tiles when possible."""
    n_out = 2 * N_ACTION
    # Per-row VMEM bytes: double-buffered streamed state + output tiles plus the
    # f32 h1/h2 intermediates produced during compute (weights are negligible).
    per_row = 4 * (2 * num_inputs + 2 * n_out + HIDDEN1 + HIDDEN2)
    cap = max(8, (VMEM_BUDGET // per_row) // 8 * 8)

    rows8 = _round_up(max(B, 1), 8)
    if rows8 <= 8:
        tb = 8
    else:
        # Aim for at least 2 grid tiles so v7x's two TensorCores both get work
        # via the "parallel" batch axis; near-zero cost on single-core v5e/v6e.
        tb = _round_up(_cdiv(rows8, 2), 8)
    return min(tb, TB_MAX, cap)


def actor_pi_forward(state, fused_params):
    """state: (B, num_inputs) float32.  Returns (mean, log_std) each (B, N_ACTION)."""
    w1, b1, w2, b2, wh, bh = fused_params
    B, num_inputs = state.shape
    n_out = 2 * N_ACTION

    TB = _pick_batch_tile(B, num_inputs)
    grid = (_cdiv(B, TB),)

    flops = 2 * B * (num_inputs * HIDDEN1 + HIDDEN1 * HIDDEN2 + HIDDEN2 * n_out)
    bytes_accessed = 4 * (
        B * num_inputs + B * n_out                    # streamed state + output
        + num_inputs * HIDDEN1 + HIDDEN1              # W1, b1
        + HIDDEN1 * HIDDEN2 + HIDDEN2                 # W2, b2
        + HIDDEN2 * n_out + n_out)                    # fused heads W, b

    out = pl.pallas_call(
        actor_pi_kernel,
        out_shape=jax.ShapeDtypeStruct((B, n_out), jnp.float32),
        grid_spec=pltpu.PrefetchScalarGridSpec(
            num_scalar_prefetch=0,
            grid=grid,
            in_specs=[
                # streamed per batch tile (ragged last tile handled by edge masking)
                pl.BlockSpec((TB, num_inputs), lambda i: (i, 0)),
                # weights/biases: constant index_map -> resident in VMEM, DMA'd once
                pl.BlockSpec((num_inputs, HIDDEN1), lambda i: (0, 0)),
                pl.BlockSpec((1, HIDDEN1), lambda i: (0, 0)),
                pl.BlockSpec((HIDDEN1, HIDDEN2), lambda i: (0, 0)),
                pl.BlockSpec((1, HIDDEN2), lambda i: (0, 0)),
                pl.BlockSpec((HIDDEN2, n_out), lambda i: (0, 0)),
                pl.BlockSpec((1, n_out), lambda i: (0, 0)),
            ],
            out_specs=pl.BlockSpec((TB, n_out), lambda i: (i, 0)),
        ),
        compiler_params=pltpu.CompilerParams(
            dimension_semantics=("parallel",),
            vmem_limit_bytes=VMEM_LIMIT),
        cost_estimate=pl.CostEstimate(
            flops=flops, transcendentals=0, bytes_accessed=bytes_accessed),
    )(state, w1, b1, w2, b2, wh, bh)

    mean = out[:, :N_ACTION]
    log_std = out[:, N_ACTION:]
    return mean, log_std


def init_params(key, num_inputs):
    """Deterministic param init mirroring the shapes in ActorPiModel.__init__.

    Weights are stored transposed (in, out) relative to torch's (out, in)."""
    k = jax.random.split(key, 8)

    def uniform(key_, shape, bound):
        return jax.random.uniform(key_, shape, jnp.float32, -bound, bound)

    # linear1: torch default init bound = 1/sqrt(fan_in)
    b1w = 1.0 / jnp.sqrt(jnp.float32(num_inputs))
    w1 = uniform(k[0], (num_inputs, HIDDEN1), b1w)
    b1 = uniform(k[1], (1, HIDDEN1), b1w)

    # linear2
    b2w = 1.0 / jnp.sqrt(jnp.float32(HIDDEN1))
    w2 = uniform(k[2], (HIDDEN1, HIDDEN2), b2w)
    b2 = uniform(k[3], (1, HIDDEN2), b2w)

    # mean head: uniform(-init_w, init_w)
    wm = uniform(k[4], (HIDDEN2, N_ACTION), INIT_W)
    bm = uniform(k[5], (1, N_ACTION), INIT_W)

    # log_std head: uniform(-init_w, init_w)
    ws = uniform(k[6], (HIDDEN2, N_ACTION), INIT_W)
    bs = uniform(k[7], (1, N_ACTION), INIT_W)

    return (w1, b1, w2, b2, wm, bm, ws, bs)


def prepare_params(params):
    """One-time fusion of the two 4-wide heads into a single (64, 8) matmul."""
    w1, b1, w2, b2, wm, bm, ws, bs = params
    wh = jnp.concatenate([wm, ws], axis=1)   # (HIDDEN2, 2*N_ACTION)
    bh = jnp.concatenate([bm, bs], axis=1)   # (1, 2*N_ACTION)
    return (w1, b1, w2, b2, wh, bh)


def reference_forward(state, params):
    w1, b1, w2, b2, wm, bm, ws, bs = params
    h1 = jnp.maximum(state @ w1 + b1, 0.0)
    h2 = jnp.maximum(h1 @ w2 + b2, 0.0)
    mean = h2 @ wm + bm
    log_std = jnp.clip(h2 @ ws + bs, LOG_STD_MIN, LOG_STD_MAX)
    return mean, log_std


if __name__ == "__main__":
    key = jax.random.PRNGKey(0)
    k_state, k_params = jax.random.split(key)

    batch = 8
    num_inputs = 32

    state = jax.random.normal(k_state, (batch, num_inputs), jnp.float32)
    params = init_params(k_params, num_inputs)
    fused = prepare_params(params)   # fused head weights built once, outside forward

    mean, log_std = actor_pi_forward(state, fused)
    mean, log_std = jax.block_until_ready((mean, log_std))

    ref_mean, ref_log_std = reference_forward(state, params)
    assert mean.shape == (batch, N_ACTION)
    assert log_std.shape == (batch, N_ACTION)
    assert jnp.allclose(mean, ref_mean, atol=1e-5, rtol=1e-5)
    assert jnp.allclose(log_std, ref_log_std, atol=1e-5, rtol=1e-5)

    # Ragged batch (not a multiple of 8 / TB): exercises the cdiv grid +
    # block-edge-masking path with grid > 1 and no padded HBM copy.
    batch2 = 13
    state2 = jax.random.normal(jax.random.PRNGKey(1), (batch2, num_inputs), jnp.float32)
    m2, ls2 = jax.block_until_ready(actor_pi_forward(state2, fused))
    rm2, rls2 = reference_forward(state2, params)
    assert m2.shape == (batch2, N_ACTION)
    assert jnp.allclose(m2, rm2, atol=1e-5, rtol=1e-5)
    assert jnp.allclose(ls2, rls2, atol=1e-5, rtol=1e-5)

    print("KERNEL_OK")
</pallas_src>

<mosaic_0001>
module attributes {stable_mosaic.version = 11 : i64} {
  func.func @actor_pi_kernel(%arg0: i32, %arg1: memref<8x32xf32, #tpu.memory_space<vmem>>, %arg2: memref<32x128xf32, #tpu.memory_space<vmem>>, %arg3: memref<1x128xf32, #tpu.memory_space<vmem>>, %arg4: memref<128x64xf32, #tpu.memory_space<vmem>>, %arg5: memref<1x64xf32, #tpu.memory_space<vmem>>, %arg6: memref<64x8xf32, #tpu.memory_space<vmem>>, %arg7: memref<1x8xf32, #tpu.memory_space<vmem>>, %arg8: memref<8x8xf32, #tpu.memory_space<vmem>>) attributes {dimension_semantics = [#tpu.dimension_semantics<parallel>], iteration_bounds = array<i64: 1>, scalar_prefetch = 0 : i64, scratch_operands = 0 : i64, tpu.core_type = #tpu.core_type<tc>, window_params = [{transform_indices = @transform_0, window_bounds = array<i64: 8, 32>}, {pipeline_mode = #tpu.pipeline_mode<synchronous>, transform_indices = @transform_1, window_bounds = array<i64: 32, 128>}, {pipeline_mode = #tpu.pipeline_mode<synchronous>, transform_indices = @transform_2, window_bounds = array<i64: 1, 128>}, {pipeline_mode = #tpu.pipeline_mode<synchronous>, transform_indices = @transform_3, window_bounds = array<i64: 128, 64>}, {pipeline_mode = #tpu.pipeline_mode<synchronous>, transform_indices = @transform_4, window_bounds = array<i64: 1, 64>}, {pipeline_mode = #tpu.pipeline_mode<synchronous>, transform_indices = @transform_5, window_bounds = array<i64: 64, 8>}, {pipeline_mode = #tpu.pipeline_mode<synchronous>, transform_indices = @transform_6, window_bounds = array<i64: 1, 8>}, {transform_indices = @transform_7, window_bounds = array<i64: 8, 8>}]} {
    %c0 = arith.constant 0 : index
    %c0_0 = arith.constant 0 : index
    %0 = vector.load %arg1[%c0, %c0_0] : memref<8x32xf32, #tpu.memory_space<vmem>>, vector<8x32xf32>
    %c0_1 = arith.constant 0 : index
    %c0_2 = arith.constant 0 : index
    %1 = vector.load %arg2[%c0_1, %c0_2] : memref<32x128xf32, #tpu.memory_space<vmem>>, vector<32x128xf32>
    %cst = arith.constant dense<0.000000e+00> : vector<8x128xf32>
    %2 = tpu.matmul %0, %1, %cst {dimension_numbers = #tpu.dot_dimension_numbers<[1], [0], [0], [1], [0, 0, 1, 1], [], []>} : vector<8x32xf32>, vector<32x128xf32>, vector<8x128xf32> -> vector<8x128xf32>
    %c0_3 = arith.constant 0 : index
    %c0_4 = arith.constant 0 : index
    %3 = vector.load %arg3[%c0_3, %c0_4] : memref<1x128xf32, #tpu.memory_space<vmem>>, vector<1x128xf32>
    %4 = vector.broadcast %3 : vector<1x128xf32> to vector<8x128xf32>
    %5 = arith.addf %2, %4 : vector<8x128xf32>
    %cst_5 = arith.constant 0.000000e+00 : f32
    %6 = vector.broadcast %cst_5 : f32 to vector<8x128xf32>
    %7 = arith.maximumf %5, %6 : vector<8x128xf32>
    %c0_6 = arith.constant 0 : index
    %c0_7 = arith.constant 0 : index
    %8 = vector.load %arg4[%c0_6, %c0_7] : memref<128x64xf32, #tpu.memory_space<vmem>>, vector<128x64xf32>
    %cst_8 = arith.constant dense<0.000000e+00> : vector<8x64xf32>
    %9 = tpu.matmul %7, %8, %cst_8 {dimension_numbers = #tpu.dot_dimension_numbers<[1], [0], [0], [1], [0, 0, 1, 1], [], []>} : vector<8x128xf32>, vector<128x64xf32>, vector<8x64xf32> -> vector<8x64xf32>
    %c0_9 = arith.constant 0 : index
    %c0_10 = arith.constant 0 : index
    %10 = vector.load %arg5[%c0_9, %c0_10] : memref<1x64xf32, #tpu.memory_space<vmem>>, vector<1x64xf32>
    %11 = vector.broadcast %10 : vector<1x64xf32> to vector<8x64xf32>
    %12 = arith.addf %9, %11 : vector<8x64xf32>
    %cst_11 = arith.constant 0.000000e+00 : f32
    %13 = vector.broadcast %cst_11 : f32 to vector<8x64xf32>
    %14 = arith.maximumf %12, %13 : vector<8x64xf32>
    %c0_12 = arith.constant 0 : index
    %c0_13 = arith.constant 0 : index
    %15 = vector.load %arg6[%c0_12, %c0_13] : memref<64x8xf32, #tpu.memory_space<vmem>>, vector<64x8xf32>
    %cst_14 = arith.constant dense<0.000000e+00> : vector<8x8xf32>
    %16 = tpu.matmul %14, %15, %cst_14 {dimension_numbers = #tpu.dot_dimension_numbers<[1], [0], [0], [1], [0, 0, 1, 1], [], []>} : vector<8x64xf32>, vector<64x8xf32>, vector<8x8xf32> -> vector<8x8xf32>
    %c0_15 = arith.constant 0 : index
    %c0_16 = arith.constant 0 : index
    %17 = vector.load %arg7[%c0_15, %c0_16] : memref<1x8xf32, #tpu.memory_space<vmem>>, vector<1x8xf32>
    %18 = vector.broadcast %17 : vector<1x8xf32> to vector<8x8xf32>
    %19 = arith.addf %16, %18 : vector<8x8xf32>
    %20 = tpu.iota {dimensions = array<i32: 1>} : vector<8x8xi32>
    %cst_17 = arith.constant -2.000000e+01 : f32
    %cst_18 = arith.constant 2.000000e+00 : f32
    %21 = vector.broadcast %cst_17 : f32 to vector<8x8xf32>
    %22 = arith.maximumf %21, %19 : vector<8x8xf32>
    %23 = vector.broadcast %cst_18 : f32 to vector<8x8xf32>
    %24 = arith.minimumf %23, %22 : vector<8x8xf32>
    %c4_i32 = arith.constant 4 : i32
    %25 = vector.broadcast %c4_i32 : i32 to vector<8x8xi32>
    %26 = arith.cmpi sge, %20, %25 : vector<8x8xi32>
    %27 = arith.select %26, %24, %19 : vector<8x8xi1>, vector<8x8xf32>
    %c0_19 = arith.constant 0 : index
    %c0_20 = arith.constant 0 : index
    %28 = vector.load %arg8[%c0_19, %c0_20] : memref<8x8xf32, #tpu.memory_space<vmem>>, vector<8x8xf32>
    tpu.vector_store %arg8[%c0_19, %c0_20], %27 {strides = array<i32>} : memref<8x8xf32, #tpu.memory_space<vmem>>, vector<8x8xf32>,
    return
  }
  func.func @transform_0(%arg0: i32) -> (i32, i32) {
    %c0_i32 = arith.constant 0 : i32
    %c0_i32_0 = arith.constant 0 : i32
    return %arg0, %c0_i32 : i32, i32
  }
  func.func @transform_1(%arg0: i32) -> (i32, i32) {
    %c0_i32 = arith.constant 0 : i32
    %c0_i32_0 = arith.constant 0 : i32
    %c0_i32_1 = arith.constant 0 : i32
    return %c0_i32, %c0_i32_0 : i32, i32
  }
  func.func @transform_2(%arg0: i32) -> (i32, i32) {
    %c0_i32 = arith.constant 0 : i32
    %c0_i32_0 = arith.constant 0 : i32
    %c0_i32_1 = arith.constant 0 : i32
    return %c0_i32, %c0_i32_0 : i32, i32
  }
  func.func @transform_3(%arg0: i32) -> (i32, i32) {
    %c0_i32 = arith.constant 0 : i32
    %c0_i32_0 = arith.constant 0 : i32
    %c0_i32_1 = arith.constant 0 : i32
    return %c0_i32, %c0_i32_0 : i32, i32
  }
  func.func @transform_4(%arg0: i32) -> (i32, i32) {
    %c0_i32 = arith.constant 0 : i32
    %c0_i32_0 = arith.constant 0 : i32
    %c0_i32_1 = arith.constant 0 : i32
    return %c0_i32, %c0_i32_0 : i32, i32
  }
  func.func @transform_5(%arg0: i32) -> (i32, i32) {
    %c0_i32 = arith.constant 0 : i32
    %c0_i32_0 = arith.constant 0 : i32
    %c0_i32_1 = arith.constant 0 : i32
    return %c0_i32, %c0_i32_0 : i32, i32
  }
  func.func @transform_6(%arg0: i32) -> (i32, i32) {
    %c0_i32 = arith.constant 0 : i32
    %c0_i32_0 = arith.constant 0 : i32
    %c0_i32_1 = arith.constant 0 : i32
    return %c0_i32, %c0_i32_0 : i32, i32
  }
  func.func @transform_7(%arg0: i32) -> (i32, i32) {
    %c0_i32 = arith.constant 0 : i32
    %c0_i32_0 = arith.constant 0 : i32
    return %arg0, %c0_i32 : i32, i32
  }
}

</mosaic_0001>

<bundles_post_ra>
// kernel: tpu_custom_call.1
= control target key start
LH: loop header
LB: loop body
LE: loop exit
PB: predicated region body
PF: predicated region fallthrough
CT: control target
= control target key end

     0   :  { %v490_v3 = vmov 0.0|0.0   ;;  %vm491_vm0 = vmmov 0   ;;  %v492_v6 = vmov 0.0   ;;  %s659_s0 = inlined_call_operand.vmem [shape: f32[8,32], index: 0, kind: input, shape index: {}]   ;;  %s660_s1 = inlined_call_operand.vmem [shape: f32[32,128], index: 1, kind: input, shape index: {}]   ;;  %s661_s2 = inlined_call_operand.vmem [shape: f32[1,128], index: 2, kind: input, shape index: {}]   ;;  %s662_s3 = inlined_call_operand.vmem [shape: f32[128,64], index: 3, kind: input, shape index: {}]   ;;  %s663_s4 = inlined_call_operand.vmem [shape: f32[1,64], index: 4, kind: input, shape index: {}]   ;;  %s664_s5 = inlined_call_operand.vmem [shape: f32[64,8], index: 5, kind: input, shape index: {}]   ;;  %s665_s6 = inlined_call_operand.vmem [shape: f32[1,8], index: 6, kind: input, shape index: {}]   ;;  %s666_s7 = inlined_call_operand.hbm [shape: f32[8,8], index: 7, kind: output, shape index: {}]  }
   0x1   :  { %v28_v0 = vld [vmem:[%s660_s1] sm:$0xff]  ;;  %v29_v1 = vld [vmem:[%s660_s1 + $0x8] sm:$0xff]  ;;  %v30_v2 = vld [vmem:[%s660_s1 + $0x10] sm:$0xff]  ;;  %420 = vmatprep.subr.bf16.mxu0 %v490_v3  ;;  %363 = vmatprep.mubr.msk.f32.mxu0 %vm491_vm0, %v492_v6 }
   0x2   :  { %v421_v4 = vpack.c.bf16 %v29_v1, %v28_v0  ;;  %v31_v5 = vld [vmem:[%s660_s1 + $0x18] sm:$0xff]  ;;  %v114_v7 = vld [vmem:[%s662_s3] sm:$0xff]  ;;  %426 = vmatprep.subr.bf16.mxu1 %v490_v3  ;;  %v115_v8 = vld [vmem:[%s662_s3 + $0x8] sm:$0xff]  ;;  %398 = vmatprep.mubr.msk.f32.mxu1 %vm491_vm0, %v492_v6 }
   0x3   :  { %v116_v9 = vld [vmem:[%s662_s3 + $0x10] sm:$0xff]  ;;  %v117_v10 = vld [vmem:[%s662_s3 + $0x18] sm:$0xff]  ;;  %v424_v11 = vpack.c.bf16 %v31_v5, %v30_v2  ;;  %v427_v12 = vpack.c.bf16 %v115_v8, %v114_v7  ;;  %v118_v14 = vld [vmem:[%s662_s3 + $0x20] sm:$0xff] }
   0x4   :  { %422 = vmatpush3.bf16.msra.mxu0 %v421_v4  ;;  %v430_v13 = vpack.c.bf16 %v117_v10, %v116_v9  ;;  %v119_v15 = vld [vmem:[%s662_s3 + $0x28] sm:$0xff] }
   0x5   :  { %423 = vmatprep.subr.bf16.mxu0 %v490_v3  ;;  %428 = vmatpush3.bf16.msra.mxu1 %v427_v12 }
   0x6   :  { %429 = vmatprep.subr.bf16.mxu1 %v490_v3 }
   0x7   :  { %12 = vsyncpa [#allocation3], 0  ;;  %v27_v16 = vld [vmem:[%s659_s0] sm:$0xff]  ;;  %vm39_vm1 = vcmask 261120   ;;  %v433_v17 = vpack.c.bf16 %v119_v15, %v118_v14  ;;  %v120_v18 = vld [vmem:[%s662_s3 + $0x30] sm:$0xff]  ;;  %vm223_vm2 = vcmask 523264   ;;  %v297_v55 = vlaneseq }
   0x8   :  { %425 = vmatpush3.bf16.msra.mxu0 %v424_v11  ;;  %v121_v19 = vld [vmem:[%s662_s3 + $0x38] sm:$0xff]  ;;  %v122_v21 = vld [vmem:[%s662_s3 + $0x40] sm:$0xff]  ;;  %v123_v22 = vld [vmem:[%s662_s3 + $0x48] sm:$0xff]  ;;  %vm303_vm4 = vcmask 64512  }
   0x9   :  { %450 = vmatprep.subr.bf16.mxu0 %v490_v3  ;;  %431 = vmatpush3.bf16.msra.mxu1 %v430_v13  ;;  %v436_v20 = vpack.c.bf16 %v121_v19, %v120_v18  ;;  %v439_v23 = vpack.c.bf16 %v123_v22, %v122_v21  ;;  %v124_v24 = vld [vmem:[%s662_s3 + $0x50] sm:$0xff]  ;;  %v125_v25 = vld [vmem:[%s662_s3 + $0x58] sm:$0xff]  ;;  %v126_v27 = vld [vmem:[%s662_s3 + $0x60] sm:$0xff]  ;;  %v298_v58 = vand.u32 127, %v297_v55 }
   0xa   :  { %432 = vmatprep.subr.bf16.mxu1 %v490_v3  ;;  %v442_v26 = vpack.c.bf16 %v125_v25, %v124_v24  ;;  %v127_v28 = vld [vmem:[%s662_s3 + $0x68] sm:$0xff]  ;;  %v128_v30 = vld [vmem:[%s662_s3 + $0x70] sm:$0xff]  ;;  %v129_v31 = vld [vmem:[%s662_s3 + $0x78] sm:$0xff] }
   0xb   :  { %364 = vmatmul.mubr.msk.f32.vlgmr.msra.gmra.mrb[0].mxu0 %vm39_vm1, %v27_v16  ;;  %v445_v29 = vpack.c.bf16 %v127_v28, %v126_v27  ;;  %v448_v32 = vpack.c.bf16 %v129_v31, %v128_v30  ;;  %v208_v33 = vld [vmem:[%s664_s5] sm:$0xff]  ;;  %v209_v34 = vld [vmem:[%s664_s5 + $0x8] sm:$0xff]  ;;  %v210_v35 = vld [vmem:[%s664_s5 + $0x10] sm:$0xff]  ;;  %vm301_vm3 = vcmp.ge.s32.totalorder %v298_v58, 4 }
   0xc   :  { %417 = vmatprep.mubr.msk.f32.mxu0 %vm491_vm0, %v492_v6  ;;  %v451_v36 = vpack.c.bf16 %v209_v34, %v208_v33  ;;  %v211_v37 = vld [vmem:[%s664_s5 + $0x18] sm:$0xff]  ;;  %v212_v39 = vld [vmem:[%s664_s5 + $0x20] sm:$0xff]  ;;  %v213_v40 = vld [vmem:[%s664_s5 + $0x28] sm:$0xff] }
   0xd   :  { %434 = vmatpush3.bf16.msra.mxu1 %v433_v17  ;;  %v454_v38 = vpack.c.bf16 %v211_v37, %v210_v35  ;;  %v457_v41 = vpack.c.bf16 %v213_v40, %v212_v39  ;;  %v319_v42 = vld [vmem:[%s661_s2] ss:$0 sm:$0xff]  ;;  %v214_v47 = vld [vmem:[%s664_s5 + $0x30] sm:$0xff]  ;;  %v215_v48 = vld [vmem:[%s664_s5 + $0x38] sm:$0xff]  ;;  %s493_s5 = smov [#allocation2]  }
   0xe   :  { %435 = vmatprep.subr.bf16.mxu1 %v490_v3  ;;  %452 = vmatpush3.bf16.msra.mxu0 %v451_v36  ;;  %v460_v49 = vpack.c.bf16 %v215_v48, %v214_v47  ;;  %v321_v50 = vld [vmem:[%s663_s4] ss:$0 sm:$0xff]  ;;  %s311_s13 = sshll.u32 %s493_s5, 4  ;;  %s312_s13 = int_to_ptr.vmem [resolvable:$true] %s311_s13 }
   0xf   :  { %453 = vmatprep.subr.bf16.mxu0 %v490_v3  ;;  %v322_v56 = vld [vmem:[%s665_s6] ss:$0 sm:$0xff]  ;;  %s466_s4 = scalar_lea.vmem %s312_s13, 128  ;;  %p471_p1 = scmp.lt.s32.totalorder %s312_s13, %s312_s13 }
  0x10   :  { %p467_p0 = scmp.ne.s32.totalorder %s312_s13, %s466_s4  ;;  %p472_p2 = scmp.lt.s32.totalorder %s466_s4, %s466_s4 }
  0x11   :  { %437 = vmatpush3.bf16.msra.mxu1 %v436_v20 }
  0x12   :  { %438 = vmatprep.subr.bf16.mxu1 %v490_v3  ;;  %455 = vmatpush3.bf16.msra.mxu0 %v454_v38  ;;  %p473_p3 = por %p472_p2, %p471_p1 }
  0x13   :  { %456 = vmatprep.subr.bf16.mxu0 %v490_v3 }
  0x14   :  { %p474_p4 = pnand %p473_p3, %p467_p0 }
  0x15   :  { %440 = vmatpush3.bf16.msra.mxu1 %v439_v23 }
  0x16   :  { %441 = vmatprep.subr.bf16.mxu1 %v490_v3  ;;  %458 = vmatpush3.bf16.msra.mxu0 %v457_v41 }
  0x17   :  { %459 = vmatprep.subr.bf16.mxu0 %v490_v3 }
  0x19   :  { %443 = vmatpush3.bf16.msra.mxu1 %v442_v26 }
  0x1a   :  { %444 = vmatprep.subr.bf16.mxu1 %v490_v3  ;;  %461 = vmatpush3.bf16.msra.mxu0 %v460_v49 }
  0x1d   :  { %446 = vmatpush3.bf16.msra.mxu1 %v445_v29 }
  0x1e   :  { %447 = vmatprep.subr.bf16.mxu1 %v490_v3 }
  0x21   :  { %449 = vmatpush3.bf16.msra.mxu1 %v448_v32 }
  0xde   :  { %v109_v43 = vpop.f32.mrb[0].mxu0 }
  0xdf   :  { %v110_v44 = vadd.f32 %v319_v42, %v109_v43  ;;  %v365_v45 = vpop.f32.mrb[1].mxu0 }
  0xe1   :  { %v113_v46 = vmax.f32 %v110_v44, 0.0 }
  0xe3   :  { %399 = vmatmul.mubr.f32.vlgmr.msra.gmra.mrb[0].mxu1 %v113_v46 }
 0x1b6   :  { %v203_v51 = vpop.f32.mrb[0].mxu1 }
 0x1b7   :  { %v204_v52 = vadd.f32 %v321_v50, %v203_v51  ;;  %v400_v53 = vpop.f32.mrb[1].mxu1 }
 0x1b9   :  { %v207_v54 = vmax.f32 %v204_v52, 0.0 }
 0x1bb   :  { %418 = vmatmul.mubr.msk.f32.vlgmr.msra.gmra.mrb[2].mxu0 %vm223_vm2, %v207_v54 }
 0x28e   :  { %v293_v57 = vpop.f32.mrb[2].mxu0 }
 0x28f   :  { %v294_v59 = vadd.f32 %v322_v56, %v293_v57  ;;  %v419_v60 = vpop.f32.mrb[3].mxu0 }
 0x291   :  { %v299_v61 = vmax.f32 %v294_v59, -20.0 }
 0x293   :  { %v300_v62 = vmin.f32 %v299_v61, 2.0 }
 0x295   :  { %v302_v63 = vsel %vm301_vm3, %v300_v62, %v294_v59 }
 0x296   :  { %304 = vst.msk [vmem:[#allocation2] sm:$0xff] %vm303_vm4, %v302_v63 }
 0x297   :  { %477 = shalt.err (!%p474_p4)
}
 0x298   :  { %s478_s15 = scalar_lea.hbm %s666_s7, 128 }
 0x299   :  { %p479_p5 = scmp.ne.s32.totalorder %s666_s7, %s478_s15  ;;  %p482_p6 = scmp.lt.u32.totalorder %s478_s15, %s666_s7 }
 0x29b   :  { %p484_p7 = pnand %p482_p6, %p479_p5 }
 0x29d   :  { %487 = shalt.err (!%p484_p7)
}
 0x29e   :  { %314 = dma.vmem_to_hbm [thread:$0]  %s312_s13, 128, %s666_s7, [#allocation3]  }
 0x29f   :  { %488 = dma.done.wait [#allocation3], 128  }
 0x2a0   :  { %489 = vsyncadd [#allocation3], 4294967168 }
 0x2a1   :  { %318 = vsyncpa [#allocation3], 1 }

</bundles_post_ra>
